<compile_context>
chip_gen: v5e
topology: v5e:2x2
jax: 0.10.0
libtpu: 0.0.40
codegen_flags: <defaults>
</compile_context>

<pallas_src>
import functools

import jax
import jax.numpy as jnp
from jax import lax
from jax.experimental import pallas as pl
from jax.experimental.pallas import tpu as pltpu


# ---------------------------------------------------------------------------
# Tile-size / VMEM budgeting
# ---------------------------------------------------------------------------
def _round_up(x, m):
    return ((x + m - 1) // m) * m


def _vmem_budget_bytes():
    # Pipeline-buffer budget: stay well under the scoped default (32 MiB on
    # v6e/v7x, raised from 16 MiB on v5e via vmem_limit_bytes below) and far
    # under v7x's 64 MiB *physical* VMEM.
    try:
        phys = int(pltpu.get_tpu_info().vmem_capacity_bytes)
    except Exception:  # conservative fallback: smallest per-core VMEM (v7x)
        phys = 64 * 1024 * 1024
    return min(phys // 4, 16 * 1024 * 1024)


def _pick_tm(flat_len, C, N, in_itemsize, target=2048):
    """Lane-dense column tile (multiple of 128).

    Large tiles amortize the ~0.35us/step pipeline overhead.  No ">=2 grid
    steps" heuristic: plain 'parallel' semantics don't shard across v7x's two
    TensorCores anyway, and halving the tile costs more than it recovers on a
    bandwidth-bound kernel.  Capped so 2 double-buffered input views + the
    double-buffered output + the halo scratch fit the VMEM budget.
    """
    tm = min(_round_up(target, 128), _round_up(flat_len, 128))
    per_col = 6 * C * in_itemsize + 2 * N * 4  # (2 views * 2 bufs + scratch) + 2 out bufs
    cap = max(128, (_vmem_budget_bytes() // per_col) // 128 * 128)
    return max(128, min(tm, cap))


# ---------------------------------------------------------------------------
# Pallas kernel: conv as ks*ks accumulated shifted matmuls, lane-dense output.
# ---------------------------------------------------------------------------
def _conv_shuffle_kernel(w_ref, b_ref, cur_ref, nxt_ref, o_ref, halo_ref, *, offsets):
    # w_ref:    (ks*ks, N, C)  resident per-tap weights, w_ref[t][n, c] = W[n, c, ki, kj]
    # b_ref:    (N, 1)         resident bias (f32)
    # cur_ref:  (1, C, tm)     flat-spatial input tile i of image b
    # nxt_ref:  (1, C, tm)     tile i+1 (supplies the conv halo; max tap shift < tm)
    # o_ref:    (1, N, tm)     lane-dense output tile -> unmasked vst
    # halo_ref: (C, 2*tm)      VMEM scratch holding [cur | next]
    tm = o_ref.shape[2]
    halo_ref[:, :tm] = cur_ref[0]
    halo_ref[:, tm:] = nxt_ref[0]

    acc = jnp.zeros(o_ref.shape[1:], dtype=jnp.float32)
    for t, off in enumerate(offsets):            # static Python unroll over ks*ks taps
        acc = acc + jnp.dot(w_ref[t], halo_ref[:, off:off + tm],
                            preferred_element_type=jnp.float32)
    o_ref[0] = (acc + b_ref[...]).astype(o_ref.dtype)


# ---------------------------------------------------------------------------
# Module forward: conv (Pallas) + pixel shuffle (single fused XLA transpose).
# ---------------------------------------------------------------------------
def pixel_shuffle_module(x, weight, bias, scale, ks, *,
                         tm_target=2048, compute_dtype=jnp.float32):
    """Forward of PixelShuffle(dim, scale, kernel_size).

    x:      [B, C, H, W]            (NCHW, float32)
    weight: [C*scale^2, C, ks, ks]  (PyTorch Conv2d layout)
    bias:   [C*scale^2]
    returns [B, C, H*scale, W*scale]
    """
    B, C, H, W = x.shape
    r = scale
    N = C * r * r
    assert weight.shape == (N, C, ks, ks)
    p = ks // 2
    Hp, Wp = H + 2 * p, W + 2 * p
    flat = Hp * Wp                       # per-image padded flat spatial length
    halo = 2 * p * Wp + 2 * p            # largest tap shift ki*Wp + kj

    in_isz = jnp.dtype(compute_dtype).itemsize
    tm = _pick_tm(flat, C, N, in_isz, tm_target)
    assert halo <= tm, "image width too large for this tile size; raise tm_target"
    tpb = (flat + tm - 1) // tm          # tiles per image
    L_in = (tpb + 1) * tm                # +1 tile keeps the 'next' halo view in-bounds

    # Single input pad: conv 'same' halo + flat tail (no materialized im2col).
    xp = jnp.pad(x, ((0, 0), (0, 0), (p, p), (p, p)))                 # [B, C, Hp, Wp]
    xf = jnp.pad(xp.reshape(B, C, flat), ((0, 0), (0, 0), (0, L_in - flat)))
    xf = xf.astype(compute_dtype)                                     # [B, C, L_in]

    # Per-tap weights: w9[ki*ks + kj, n, c] = weight[n, c, ki, kj].
    w9 = jnp.transpose(weight, (2, 3, 0, 1)).reshape(ks * ks, N, C).astype(compute_dtype)
    bias2d = bias.reshape(N, 1).astype(jnp.float32)
    offsets = tuple(ki * Wp + kj for ki in range(ks) for kj in range(ks))

    conv_flat = pl.pallas_call(
        functools.partial(_conv_shuffle_kernel, offsets=offsets),
        out_shape=jax.ShapeDtypeStruct((B, N, tpb * tm), jnp.float32),
        grid_spec=pltpu.PrefetchScalarGridSpec(
            num_scalar_prefetch=0,
            grid=(B, tpb),
            in_specs=[
                pl.BlockSpec((ks * ks, N, C), lambda b, i: (0, 0, 0)),  # weights, resident
                pl.BlockSpec((N, 1), lambda b, i: (0, 0)),              # bias, resident
                pl.BlockSpec((1, C, tm), lambda b, i: (b, 0, i)),       # current tile
                pl.BlockSpec((1, C, tm), lambda b, i: (b, 0, i + 1)),   # next tile (halo)
            ],
            out_specs=pl.BlockSpec((1, N, tm), lambda b, i: (b, 0, i)),
            scratch_shapes=[pltpu.VMEM((C, 2 * tm), compute_dtype)],
        ),
        compiler_params=pltpu.CompilerParams(
            dimension_semantics=("parallel", "parallel"),
            vmem_limit_bytes=32 * 1024 * 1024,
        ),
    )(w9, bias2d, xf, xf)

    # Valid conv outputs sit at flat index h*Wp + w (h < H, w < W).  The slice +
    # pixel-shuffle permutation below is a single XLA transpose/copy pass.
    y = conv_flat[:, :, :flat].reshape(B, C, r, r, Hp, Wp)[:, :, :, :, :H, :W]
    y = y.transpose(0, 1, 4, 2, 5, 3)                                  # [B, C, H, r, W, r]
    return y.reshape(B, C, H * r, W * r)
    # TODO(synk): fold the (H, r, W, r) interleave into the kernel's out_specs
    # (per-(ri, rj) strided lane stores spanning whole image rows) to remove
    # this last full-output HBM pass.


# ---------------------------------------------------------------------------
# Reference (pure JAX/XLA) for correctness checking.
# ---------------------------------------------------------------------------
def _reference(x, weight, bias, scale, ks):
    p = ks // 2
    y = lax.conv_general_dilated(
        x, weight, window_strides=(1, 1), padding=((p, p), (p, p)),
        dimension_numbers=("NCHW", "OIHW", "NCHW"))
    y = y + bias.reshape(1, -1, 1, 1)
    B, Co, H, W = y.shape
    C = Co // (scale * scale)
    y = y.reshape(B, C, scale, scale, H, W).transpose(0, 1, 4, 2, 5, 3)
    return y.reshape(B, C, H * scale, W * scale)


if __name__ == "__main__":
    # Small shapes consistent with the module: dim=4, scale=2, kernel_size=3.
    B, dim, H, W = 2, 4, 16, 16
    scale, ks = 2, 3
    C_out = dim * scale * scale

    key = jax.random.PRNGKey(0)
    kx, kw, kb = jax.random.split(key, 3)
    x = jax.random.normal(kx, (B, dim, H, W), dtype=jnp.float32)
    weight = jax.random.normal(kw, (C_out, dim, ks, ks), dtype=jnp.float32) * 0.1
    bias = jax.random.normal(kb, (C_out,), dtype=jnp.float32) * 0.1

    fwd = jax.jit(functools.partial(pixel_shuffle_module, scale=scale, ks=ks))
    out = jax.block_until_ready(fwd(x, weight, bias))

    ref = _reference(x, weight, bias, scale, ks)
    assert out.shape == (B, dim, H * scale, W * scale)
    assert jnp.allclose(out, ref, atol=1e-3, rtol=1e-3)

    print("KERNEL_OK")
</pallas_src>

<mosaic_0001>
module attributes {stable_mosaic.version = 11 : i64} {
  func.func @_conv_shuffle_kernel(%arg0: i32, %arg1: i32, %arg2: memref<9x16x4xf32, #tpu.memory_space<vmem>>, %arg3: memref<16x1xf32, #tpu.memory_space<vmem>>, %arg4: memref<1x4x384xf32, #tpu.memory_space<vmem>>, %arg5: memref<1x4x384xf32, #tpu.memory_space<vmem>>, %arg6: memref<1x16x384xf32, #tpu.memory_space<vmem>>, %arg7: memref<4x768xf32, #tpu.memory_space<vmem>>) attributes {dimension_semantics = [#tpu.dimension_semantics<parallel>, #tpu.dimension_semantics<parallel>], iteration_bounds = array<i64: 2, 1>, scalar_prefetch = 0 : i64, scratch_operands = 1 : i64, tpu.core_type = #tpu.core_type<tc>, window_params = [{pipeline_mode = #tpu.pipeline_mode<synchronous>, transform_indices = @transform_0, window_bounds = array<i64: 9, 16, 4>}, {pipeline_mode = #tpu.pipeline_mode<synchronous>, transform_indices = @transform_1, window_bounds = array<i64: 16, 1>}, {transform_indices = @transform_2, window_bounds = array<i64: 1, 4, 384>}, {transform_indices = @transform_3, window_bounds = array<i64: 1, 4, 384>}, {transform_indices = @transform_4, window_bounds = array<i64: 1, 16, 384>}]} {
    %c0 = arith.constant 0 : index
    %c0_0 = arith.constant 0 : index
    %c0_1 = arith.constant 0 : index
    %0 = vector.load %arg4[%c0, %c0_0, %c0_1] : memref<1x4x384xf32, #tpu.memory_space<vmem>>, vector<1x4x384xf32>
    %1 = vector.shape_cast %0 : vector<1x4x384xf32> to vector<4x384xf32>
    %c0_2 = arith.constant 0 : index
    %c0_3 = arith.constant 0 : index
    %2 = vector.load %arg7[%c0_2, %c0_3] : memref<4x768xf32, #tpu.memory_space<vmem>>, vector<4x384xf32>
    tpu.vector_store %arg7[%c0_2, %c0_3], %1 {strides = array<i32>} : memref<4x768xf32, #tpu.memory_space<vmem>>, vector<4x384xf32>,
    %c0_4 = arith.constant 0 : index
    %c0_5 = arith.constant 0 : index
    %c0_6 = arith.constant 0 : index
    %3 = vector.load %arg5[%c0_4, %c0_5, %c0_6] : memref<1x4x384xf32, #tpu.memory_space<vmem>>, vector<1x4x384xf32>
    %4 = vector.shape_cast %3 : vector<1x4x384xf32> to vector<4x384xf32>
    %c0_7 = arith.constant 0 : index
    %c384 = arith.constant 384 : index
    %5 = vector.load %arg7[%c0_7, %c384] : memref<4x768xf32, #tpu.memory_space<vmem>>, vector<4x384xf32>
    tpu.vector_store %arg7[%c0_7, %c384], %4 {strides = array<i32>} : memref<4x768xf32, #tpu.memory_space<vmem>>, vector<4x384xf32>,
    %cst = arith.constant 0.000000e+00 : f32
    %6 = vector.broadcast %cst : f32 to vector<16x384xf32>
    %c0_8 = arith.constant 0 : index
    %c0_9 = arith.constant 0 : index
    %c0_10 = arith.constant 0 : index
    %7 = vector.load %arg2[%c0_8, %c0_9, %c0_10] : memref<9x16x4xf32, #tpu.memory_space<vmem>>, vector<1x16x4xf32>
    %8 = vector.shape_cast %7 : vector<1x16x4xf32> to vector<16x4xf32>
    %c0_11 = arith.constant 0 : index
    %c0_12 = arith.constant 0 : index
    %9 = vector.load %arg7[%c0_11, %c0_12] : memref<4x768xf32, #tpu.memory_space<vmem>>, vector<4x384xf32>
    %cst_13 = arith.constant dense<0.000000e+00> : vector<16x384xf32>
    %10 = tpu.matmul %8, %9, %cst_13 {dimension_numbers = #tpu.dot_dimension_numbers<[1], [0], [0], [1], [0, 0, 1, 1], [], []>} : vector<16x4xf32>, vector<4x384xf32>, vector<16x384xf32> -> vector<16x384xf32>
    %11 = arith.addf %6, %10 : vector<16x384xf32>
    %c1 = arith.constant 1 : index
    %c0_14 = arith.constant 0 : index
    %c0_15 = arith.constant 0 : index
    %12 = vector.load %arg2[%c1, %c0_14, %c0_15] : memref<9x16x4xf32, #tpu.memory_space<vmem>>, vector<1x16x4xf32>
    %13 = vector.shape_cast %12 : vector<1x16x4xf32> to vector<16x4xf32>
    %c0_16 = arith.constant 0 : index
    %c1_17 = arith.constant 1 : index
    %14 = vector.load %arg7[%c0_16, %c1_17] : memref<4x768xf32, #tpu.memory_space<vmem>>, vector<4x384xf32>
    %cst_18 = arith.constant dense<0.000000e+00> : vector<16x384xf32>
    %15 = tpu.matmul %13, %14, %cst_18 {dimension_numbers = #tpu.dot_dimension_numbers<[1], [0], [0], [1], [0, 0, 1, 1], [], []>} : vector<16x4xf32>, vector<4x384xf32>, vector<16x384xf32> -> vector<16x384xf32>
    %16 = arith.addf %11, %15 : vector<16x384xf32>
    %c2 = arith.constant 2 : index
    %c0_19 = arith.constant 0 : index
    %c0_20 = arith.constant 0 : index
    %17 = vector.load %arg2[%c2, %c0_19, %c0_20] : memref<9x16x4xf32, #tpu.memory_space<vmem>>, vector<1x16x4xf32>
    %18 = vector.shape_cast %17 : vector<1x16x4xf32> to vector<16x4xf32>
    %c0_21 = arith.constant 0 : index
    %c2_22 = arith.constant 2 : index
    %19 = vector.load %arg7[%c0_21, %c2_22] : memref<4x768xf32, #tpu.memory_space<vmem>>, vector<4x384xf32>
    %cst_23 = arith.constant dense<0.000000e+00> : vector<16x384xf32>
    %20 = tpu.matmul %18, %19, %cst_23 {dimension_numbers = #tpu.dot_dimension_numbers<[1], [0], [0], [1], [0, 0, 1, 1], [], []>} : vector<16x4xf32>, vector<4x384xf32>, vector<16x384xf32> -> vector<16x384xf32>
    %21 = arith.addf %16, %20 : vector<16x384xf32>
    %c3 = arith.constant 3 : index
    %c0_24 = arith.constant 0 : index
    %c0_25 = arith.constant 0 : index
    %22 = vector.load %arg2[%c3, %c0_24, %c0_25] : memref<9x16x4xf32, #tpu.memory_space<vmem>>, vector<1x16x4xf32>
    %23 = vector.shape_cast %22 : vector<1x16x4xf32> to vector<16x4xf32>
    %c0_26 = arith.constant 0 : index
    %c18 = arith.constant 18 : index
    %24 = vector.load %arg7[%c0_26, %c18] : memref<4x768xf32, #tpu.memory_space<vmem>>, vector<4x384xf32>
    %cst_27 = arith.constant dense<0.000000e+00> : vector<16x384xf32>
    %25 = tpu.matmul %23, %24, %cst_27 {dimension_numbers = #tpu.dot_dimension_numbers<[1], [0], [0], [1], [0, 0, 1, 1], [], []>} : vector<16x4xf32>, vector<4x384xf32>, vector<16x384xf32> -> vector<16x384xf32>
    %26 = arith.addf %21, %25 : vector<16x384xf32>
    %c4 = arith.constant 4 : index
    %c0_28 = arith.constant 0 : index
    %c0_29 = arith.constant 0 : index
    %27 = vector.load %arg2[%c4, %c0_28, %c0_29] : memref<9x16x4xf32, #tpu.memory_space<vmem>>, vector<1x16x4xf32>
    %28 = vector.shape_cast %27 : vector<1x16x4xf32> to vector<16x4xf32>
    %c0_30 = arith.constant 0 : index
    %c19 = arith.constant 19 : index
    %29 = vector.load %arg7[%c0_30, %c19] : memref<4x768xf32, #tpu.memory_space<vmem>>, vector<4x384xf32>
    %cst_31 = arith.constant dense<0.000000e+00> : vector<16x384xf32>
    %30 = tpu.matmul %28, %29, %cst_31 {dimension_numbers = #tpu.dot_dimension_numbers<[1], [0], [0], [1], [0, 0, 1, 1], [], []>} : vector<16x4xf32>, vector<4x384xf32>, vector<16x384xf32> -> vector<16x384xf32>
    %31 = arith.addf %26, %30 : vector<16x384xf32>
    %c5 = arith.constant 5 : index
    %c0_32 = arith.constant 0 : index
    %c0_33 = arith.constant 0 : index
    %32 = vector.load %arg2[%c5, %c0_32, %c0_33] : memref<9x16x4xf32, #tpu.memory_space<vmem>>, vector<1x16x4xf32>
    %33 = vector.shape_cast %32 : vector<1x16x4xf32> to vector<16x4xf32>
    %c0_34 = arith.constant 0 : index
    %c20 = arith.constant 20 : index
    %34 = vector.load %arg7[%c0_34, %c20] : memref<4x768xf32, #tpu.memory_space<vmem>>, vector<4x384xf32>
    %cst_35 = arith.constant dense<0.000000e+00> : vector<16x384xf32>
    %35 = tpu.matmul %33, %34, %cst_35 {dimension_numbers = #tpu.dot_dimension_numbers<[1], [0], [0], [1], [0, 0, 1, 1], [], []>} : vector<16x4xf32>, vector<4x384xf32>, vector<16x384xf32> -> vector<16x384xf32>
    %36 = arith.addf %31, %35 : vector<16x384xf32>
    %c6 = arith.constant 6 : index
    %c0_36 = arith.constant 0 : index
    %c0_37 = arith.constant 0 : index
    %37 = vector.load %arg2[%c6, %c0_36, %c0_37] : memref<9x16x4xf32, #tpu.memory_space<vmem>>, vector<1x16x4xf32>
    %38 = vector.shape_cast %37 : vector<1x16x4xf32> to vector<16x4xf32>
    %c0_38 = arith.constant 0 : index
    %c36 = arith.constant 36 : index
    %39 = vector.load %arg7[%c0_38, %c36] : memref<4x768xf32, #tpu.memory_space<vmem>>, vector<4x384xf32>
    %cst_39 = arith.constant dense<0.000000e+00> : vector<16x384xf32>
    %40 = tpu.matmul %38, %39, %cst_39 {dimension_numbers = #tpu.dot_dimension_numbers<[1], [0], [0], [1], [0, 0, 1, 1], [], []>} : vector<16x4xf32>, vector<4x384xf32>, vector<16x384xf32> -> vector<16x384xf32>
    %41 = arith.addf %36, %40 : vector<16x384xf32>
    %c7 = arith.constant 7 : index
    %c0_40 = arith.constant 0 : index
    %c0_41 = arith.constant 0 : index
    %42 = vector.load %arg2[%c7, %c0_40, %c0_41] : memref<9x16x4xf32, #tpu.memory_space<vmem>>, vector<1x16x4xf32>
    %43 = vector.shape_cast %42 : vector<1x16x4xf32> to vector<16x4xf32>
    %c0_42 = arith.constant 0 : index
    %c37 = arith.constant 37 : index
    %44 = vector.load %arg7[%c0_42, %c37] : memref<4x768xf32, #tpu.memory_space<vmem>>, vector<4x384xf32>
    %cst_43 = arith.constant dense<0.000000e+00> : vector<16x384xf32>
    %45 = tpu.matmul %43, %44, %cst_43 {dimension_numbers = #tpu.dot_dimension_numbers<[1], [0], [0], [1], [0, 0, 1, 1], [], []>} : vector<16x4xf32>, vector<4x384xf32>, vector<16x384xf32> -> vector<16x384xf32>
    %46 = arith.addf %41, %45 : vector<16x384xf32>
    %c8 = arith.constant 8 : index
    %c0_44 = arith.constant 0 : index
    %c0_45 = arith.constant 0 : index
    %47 = vector.load %arg2[%c8, %c0_44, %c0_45] : memref<9x16x4xf32, #tpu.memory_space<vmem>>, vector<1x16x4xf32>
    %48 = vector.shape_cast %47 : vector<1x16x4xf32> to vector<16x4xf32>
    %c0_46 = arith.constant 0 : index
    %c38 = arith.constant 38 : index
    %49 = vector.load %arg7[%c0_46, %c38] : memref<4x768xf32, #tpu.memory_space<vmem>>, vector<4x384xf32>
    %cst_47 = arith.constant dense<0.000000e+00> : vector<16x384xf32>
    %50 = tpu.matmul %48, %49, %cst_47 {dimension_numbers = #tpu.dot_dimension_numbers<[1], [0], [0], [1], [0, 0, 1, 1], [], []>} : vector<16x4xf32>, vector<4x384xf32>, vector<16x384xf32> -> vector<16x384xf32>
    %51 = arith.addf %46, %50 : vector<16x384xf32>
    %c0_48 = arith.constant 0 : index
    %c0_49 = arith.constant 0 : index
    %52 = vector.load %arg3[%c0_48, %c0_49] : memref<16x1xf32, #tpu.memory_space<vmem>>, vector<16x1xf32>
    %53 = vector.broadcast %52 : vector<16x1xf32> to vector<16x384xf32>
    %54 = arith.addf %51, %53 : vector<16x384xf32>
    %c0_50 = arith.constant 0 : index
    %c0_51 = arith.constant 0 : index
    %c0_52 = arith.constant 0 : index
    %55 = vector.load %arg6[%c0_50, %c0_51, %c0_52] : memref<1x16x384xf32, #tpu.memory_space<vmem>>, vector<1x16x384xf32>
    %56 = vector.shape_cast %55 : vector<1x16x384xf32> to vector<16x384xf32>
    %57 = vector.shape_cast %54 : vector<16x384xf32> to vector<1x16x384xf32>
    tpu.vector_store %arg6[%c0_50, %c0_51, %c0_52], %57 {strides = array<i32>} : memref<1x16x384xf32, #tpu.memory_space<vmem>>, vector<1x16x384xf32>,
    return
  }
  func.func @transform_0(%arg0: i32, %arg1: i32) -> (i32, i32, i32) {
    %c0_i32 = arith.constant 0 : i32
    %c0_i32_0 = arith.constant 0 : i32
    %c0_i32_1 = arith.constant 0 : i32
    %c0_i32_2 = arith.constant 0 : i32
    return %c0_i32, %c0_i32_0, %c0_i32_1 : i32, i32, i32
  }
  func.func @transform_1(%arg0: i32, %arg1: i32) -> (i32, i32) {
    %c0_i32 = arith.constant 0 : i32
    %c0_i32_0 = arith.constant 0 : i32
    %c0_i32_1 = arith.constant 0 : i32
    return %c0_i32, %c0_i32_0 : i32, i32
  }
  func.func @transform_2(%arg0: i32, %arg1: i32) -> (i32, i32, i32) {
    %c0_i32 = arith.constant 0 : i32
    %c0_i32_0 = arith.constant 0 : i32
    return %arg0, %c0_i32, %arg1 : i32, i32, i32
  }
  func.func @transform_3(%arg0: i32, %arg1: i32) -> (i32, i32, i32) {
    %c1_i32 = arith.constant 1 : i32
    %0 = arith.addi %arg1, %c1_i32 : i32
    %c0_i32 = arith.constant 0 : i32
    %c0_i32_0 = arith.constant 0 : i32
    return %arg0, %c0_i32, %0 : i32, i32, i32
  }
  func.func @transform_4(%arg0: i32, %arg1: i32) -> (i32, i32, i32) {
    %c0_i32 = arith.constant 0 : i32
    %c0_i32_0 = arith.constant 0 : i32
    return %arg0, %c0_i32, %arg1 : i32, i32, i32
  }
}

</mosaic_0001>

<bundles_post_ra>
// kernel: pixel_shuffle_module.1
= control target key start
LH: loop header
LB: loop body
LE: loop exit
PB: predicated region body
PF: predicated region fallthrough
CT: control target
= control target key end

     0   :  { %s1615_s15 = smov 0   ;;  %s1617_s16 = smov 0   ;;  %s1871_s0 = inlined_call_operand.vmem [shape: f32[9,16,4], index: 0, kind: input, shape index: {}]   ;;  %s1872_s1 = inlined_call_operand.vmem [shape: f32[16,1], index: 1, kind: input, shape index: {}]   ;;  %s1873_s2 = inlined_call_operand.vmem [shape: f32[2,4,768], index: 2, kind: input, shape index: {}, may-alias: {2,3}]   ;;  %s1874_s3 = inlined_call_operand.vmem [shape: f32[2,4,768], index: 3, kind: input, shape index: {}, may-alias: {2,3}]   ;;  %s1875_s4 = inlined_call_operand.vmem [shape: f32[2,16,384], index: 4, kind: output, shape index: {}]  }
   0x1   :  { %s1619_s17 = smov 0  }
   0x2 LB: > { %s26_s18 = sadd.s32 1, %s1575_s16  ;;  %p1412_p0 = scmp.ge.s32.totalorder %s1579_s17, 1  ;;  %s1579_s17 = sphi %s1619_s17, %s14_s17   ;;  %s1575_s16 = sphi %s1617_s16, %s1877_s16   ;;  %s1571_s15 = sphi %s1615_s15, %s1876_s15  }
   0x3   : > { %p28_p1 = scmp.ge.s32.totalorder %s26_s18, 2  ;;  %p204_p2 = scmp.lt.s32.totalorder %s1579_s17, 3 }
   0x5   : > { %s1879_s18 = smov (%p28_p1, %s26_s18), 0  ;;  %p205_p3 = pnand %p1412_p0, %p204_p2 }
   0x6   : > { %p249_p4 = scmp.lt.s32.totalorder (!%p205_p3), %s1571_s15, 1  ;;  %s1581_s27 = smov (!%p205_p3), 127  }
   0x7   : > { %208 = sbr.rel (%p205_p3) target bundleno = 401 (0x191), region = 36  ;;  %s1582_s28 = smov (!%p205_p3), 126  }
   0x8   : > { %s1583_s29 = smov (!%p205_p3), 110   ;;  %s1584_s30 = smov (!%p205_p3), 109  }
   0x9   : > { %s1585_s5 = smov (!%p205_p3), 108   ;;  %s1586_s6 = smov (!%p205_p3), 92  }
   0xa   : > { %s1587_s7 = smov (!%p205_p3), 91   ;;  %s1588_s8 = smov (!%p205_p3), 90  }
   0xc   : > { %s1881_s15 = smov (!%p249_p4, %s1571_s15), 1  ;;  %vm313_vm0 = vcmask 1039360   ;;  %vm324_vm1 = vcmask 1043456   ;;  %v1416_v44 = vld [vmem:[%s1871_s0 + $0x10] sm:$0xff]  ;;  %vm317_vm2 = vcmask 31744   ;;  %v1417_v45 = vld [vmem:[%s1871_s0 + $0x18] sm:$0xff] }
   0xd   : > { %s1518_s19 = smul.u32 24, %s1881_s15  ;;  %vm510_vm3 = vcmask 1031168   ;;  %v288_v50 = vld [vmem:[%s1871_s0] sm:$0xff]  ;;  %vm623_vm4 = vcmask 900096   ;;  %v289_v56 = vld [vmem:[%s1871_s0 + $0x8] sm:$0xff]  ;;  %vm736_vm5 = vcmask 891904  }
   0xe   : > { %v1436_v62 = vld [vmem:[%s1871_s0 + $0x20] sm:$0xff]  ;;  %vm849_vm6 = vcmask 883712   ;;  %vm962_vm7 = vcmask 752640   ;;  %vm1075_vm8 = vcmask 744448   ;;  %vm1188_vm9 = vcmask 736256  }
   0xf   : > { %s256_s22 = scalar_lea.vmem %s1873_s2, %s1518_s19  ;;  %s1516_s23 = sadd.s32 12, %s1518_s19 }
  0x10   : > { %v1639_v0 = vld [vmem:[%s256_s22] sm:$0xff]  ;;  %s267_s26 = scalar_lea.vmem %s1874_s3, %s1516_s23  ;;  %v281_v1 = vld [vmem:[%s256_s22 + $0x8] sm:$0xf] }
  0x11   : > { %v284_v2 = vld [vmem:[%s267_s26] sm:$0xff]  ;;  %298 = vst [vmem:[#allocation1] ss:$2 sm:$0xff] %v1639_v0 }
  0x12   : > { %283 = vst [vmem:[#allocation2 + $0x8] sm:$0xf] %v281_v1 }
  0x13   : > { %286 = vst [vmem:[#allocation2 + $0xc] sm:$0xff] %v284_v2 }
  0x18   : > { %v301_v3 = vld.sshfl [vmem:[#allocation1] sm:$0xff pattern:$0x75316420]  ;;  %v302_v4 = vld.sshfl [vmem:[#allocation1 + $0x8] sm:$0xff pattern:$0x75316420] }
  0x19   : > { %305 = vrot.lane.b32.xlu1 %v301_v3, %s1581_s27  ;;  %401 = vst [vmem:[#allocation1] ss:$2 sm:$0xff] %v1639_v0  ;;  %v291_v6 = vld [vmem:[#allocation2 + $0x8] sm:$0xf] }
  0x1a   : > { %v1646_v5 = vld [vmem:[#allocation2 + $0x8] sm:$0xff] }
  0x1b   : > { %300 = vst [vmem:[#allocation1 + $0x10] ss:$2 sm:$0xff] %v1646_v5 }
  0x20   : > { %v1649_v7 = vld.sshfl [vmem:[#allocation1] sm:$0xff pattern:$0x75316420]  ;;  %v1651_v8 = vld.sshfl [vmem:[#allocation1 + $0x8] sm:$0xff pattern:$0x75316420] }
  0x21   : > { %307 = vrot.lane.b32.xlu1 %v302_v4, %s1581_s27  ;;  %495 = vst [vmem:[#allocation1] ss:$2 sm:$0xff] %v1639_v0  ;;  %v1437_v4 = vld [vmem:[%s1871_s0 + $0x28] sm:$0xff] }
  0x22   : > { %v303_v9 = vld.sshfl [vmem:[#allocation1 + $0x10] sm:$0xff pattern:$0x75316420]  ;;  %v304_v10 = vld.sshfl [vmem:[#allocation1 + $0x18] sm:$0xff pattern:$0x75316420] }
  0x23   : > { %309 = vrot.lane.b32.xlu0 %v303_v9, %s1581_s27  ;;  %403 = vst [vmem:[#allocation1 + $0x10] ss:$2 sm:$0xff] %v291_v6 }
  0x28   : > { %v498_v11 = vld.sshfl [vmem:[#allocation1] sm:$0xff pattern:$0x75316420]  ;;  %v499_v12 = vld.sshfl [vmem:[#allocation1 + $0x8] sm:$0xff pattern:$0x75316420] }
  0x29   : > { %502 = vrot.lane.b32.xlu2 %v498_v11, %s1582_s28  ;;  %608 = vst [vmem:[#allocation1] ss:$2 sm:$0xff] %v1639_v0 }
  0x2a   : > { %v1655_v13 = vld.sshfl [vmem:[#allocation1 + $0x10] sm:$0xff pattern:$0x75316420] }
  0x2b   : > { %311 = vrot.lane.b32.xlu0 %v304_v10, %s1581_s27  ;;  %497 = vst [vmem:[#allocation1 + $0x10] ss:$2 sm:$0xff] %v1646_v5 }
  0x30   : > { %v612_v14 = vld.sshfl [vmem:[#allocation1 + $0x8] sm:$0xff pattern:$0x75316420]  ;;  %v611_v15 = vld.sshfl [vmem:[#allocation1] sm:$0xff pattern:$0x75316420] }
  0x31   : > { %617 = vrot.lane.b32.xlu1 %v612_v14, %s1583_s29  ;;  %504 = vrot.lane.b32.xlu2 %v499_v12, %s1582_s28  ;;  %721 = vst [vmem:[#allocation1] ss:$2 sm:$0xff] %v1639_v0  ;;  %v1448_v12 = vld [vmem:[%s1871_s0 + $0x38] sm:$0xff] }
  0x32   : > { %v500_v16 = vld.sshfl [vmem:[#allocation1 + $0x10] sm:$0xff pattern:$0x75316420]  ;;  %v501_v17 = vld.sshfl [vmem:[#allocation1 + $0x18] sm:$0xff pattern:$0x75316420] }
  0x33   : > { %506 = vrot.lane.b32.xlu0 %v500_v16, %s1582_s28  ;;  %610 = vst [vmem:[#allocation1 + $0x10] ss:$2 sm:$0xff] %v1646_v5  ;;  %v1458_v16 = vld [vmem:[%s1871_s0 + $0x40] sm:$0xff] }
  0x38   : > { %v724_v18 = vld.sshfl [vmem:[#allocation1] sm:$0xff pattern:$0x75316420]  ;;  %v725_v19 = vld.sshfl [vmem:[#allocation1 + $0x8] sm:$0xff pattern:$0x75316420] }
  0x39   : > { %615 = vrot.lane.b32.xlu1 %v611_v15, %s1583_s29  ;;  %834 = vst [vmem:[#allocation1] ss:$2 sm:$0xff] %v1639_v0 }
  0x3a   : > { %v613_v20 = vld.sshfl [vmem:[#allocation1 + $0x10] sm:$0xff pattern:$0x75316420]  ;;  %v614_v21 = vld.sshfl [vmem:[#allocation1 + $0x18] sm:$0xff pattern:$0x75316420] }
  0x3b   : > { %508 = vrot.lane.b32.xlu0 %v501_v17, %s1582_s28  ;;  %723 = vst [vmem:[#allocation1 + $0x10] ss:$2 sm:$0xff] %v1646_v5  ;;  %619 = vrot.lane.b32.xlu2 %v613_v20, %s1583_s29 }
  0x40   : > { %v837_v22 = vld.sshfl [vmem:[#allocation1] sm:$0xff pattern:$0x75316420]  ;;  %v838_v23 = vld.sshfl [vmem:[#allocation1 + $0x8] sm:$0xff pattern:$0x75316420] }
  0x41   : > { %947 = vst [vmem:[#allocation1] ss:$2 sm:$0xff] %v1639_v0 }
  0x42   : > { %v726_v24 = vld.sshfl [vmem:[#allocation1 + $0x10] sm:$0xff pattern:$0x75316420]  ;;  %v727_v25 = vld.sshfl [vmem:[#allocation1 + $0x18] sm:$0xff pattern:$0x75316420] }
  0x43   : > { %732 = vrot.lane.b32.xlu0 %v726_v24, %s1584_s30  ;;  %734 = vrot.lane.b32.xlu1 %v727_v25, %s1584_s30  ;;  %836 = vst [vmem:[#allocation1 + $0x10] ss:$2 sm:$0xff] %v1646_v5 }
  0x44   : > { %621 = vrot.lane.b32.xlu2 %v614_v21, %s1583_s29 }
  0x48   : > { %v950_v26 = vld.sshfl [vmem:[#allocation1] sm:$0xff pattern:$0x75316420]  ;;  %v951_v27 = vld.sshfl [vmem:[#allocation1 + $0x8] sm:$0xff pattern:$0x75316420] }
  0x49   : > { %1060 = vst [vmem:[#allocation1] ss:$2 sm:$0xff] %v1639_v0 }
  0x4a   : > { %v839_v28 = vld.sshfl [vmem:[#allocation1 + $0x10] sm:$0xff pattern:$0x75316420]  ;;  %v840_v29 = vld.sshfl [vmem:[#allocation1 + $0x18] sm:$0xff pattern:$0x75316420] }
  0x4b   : > { %730 = vrot.lane.b32.xlu0 %v725_v19, %s1584_s30  ;;  %841 = vrot.lane.b32.xlu1 %v837_v22, %s1585_s5  ;;  %949 = vst [vmem:[#allocation1 + $0x10] ss:$2 sm:$0xff] %v1646_v5  ;;  %v1459_v22 = vld [vmem:[%s1871_s0 + $0x48] sm:$0xff] }
  0x4c   : > { %728 = vrot.lane.b32.xlu2 %v724_v18, %s1584_s30 }
  0x50   : > { %v1064_v30 = vld.sshfl [vmem:[#allocation1 + $0x8] sm:$0xff pattern:$0x75316420]  ;;  %v1063_v31 = vld.sshfl [vmem:[#allocation1] sm:$0xff pattern:$0x75316420] }
  0x51   : > { %1173 = vst [vmem:[#allocation1] ss:$2 sm:$0xff] %v1639_v0 }
  0x52   : > { %v952_v32 = vld.sshfl [vmem:[#allocation1 + $0x10] sm:$0xff pattern:$0x75316420]  ;;  %v953_v33 = vld.sshfl [vmem:[#allocation1 + $0x18] sm:$0xff pattern:$0x75316420] }
  0x53   : > { %954 = vrot.lane.b32.xlu0 %v950_v26, %s1586_s6  ;;  %956 = vrot.lane.b32.xlu1 %v951_v27, %s1586_s6  ;;  %1062 = vst [vmem:[#allocation1 + $0x10] ss:$2 sm:$0xff] %v1646_v5 }
  0x54   : > { %843 = vrot.lane.b32.xlu2 %v838_v23, %s1585_s5  ;;  %v1469_v23 = vld [vmem:[%s1871_s0 + $0x50] sm:$0xff] }
  0x58   : > { %v1177_v37 = vld.sshfl [vmem:[#allocation1 + $0x8] sm:$0xff pattern:$0x75316420]  ;;  %v1176_v38 = vld.sshfl [vmem:[#allocation1] sm:$0xff pattern:$0x75316420] }
  0x5a   : > { %v1065_v34 = vld.sshfl [vmem:[#allocation1 + $0x10] sm:$0xff pattern:$0x75316420]  ;;  %v1066_v35 = vld.sshfl [vmem:[#allocation1 + $0x18] sm:$0xff pattern:$0x75316420] }
  0x5b   : > { %847 = vrot.lane.b32.xlu0 %v840_v29, %s1585_s5  ;;  %958 = vrot.lane.b32.xlu1 %v952_v32, %s1586_s6  ;;  %1175 = vst [vmem:[#allocation1 + $0x10] ss:$2 sm:$0xff] %v1646_v5 }
  0x5c   : > { %845 = vrot.lane.b32.xlu2 %v839_v28, %s1585_s5  ;;  %s1520_s5 = smul.u32 48, %s1881_s15 }
  0x62   : > { %v1178_v36 = vld.sshfl [vmem:[#allocation1 + $0x10] sm:$0xff pattern:$0x75316420]  ;;  %v1179_v39 = vld.sshfl [vmem:[#allocation1 + $0x18] sm:$0xff pattern:$0x75316420] }
  0x63   : > { %1071 = vrot.lane.b32.xlu0 %v1065_v34, %s1587_s7  ;;  %960 = vrot.lane.b32.xlu1 %v953_v33, %s1586_s6 }
  0x64   : > { %1069 = vrot.lane.b32.xlu2 %v1064_v30, %s1587_s7  ;;  %v1470_v30 = vld [vmem:[%s1871_s0 + $0x58] sm:$0xff] }
  0x6b   : > { %1073 = vrot.lane.b32.xlu0 %v1066_v35, %s1587_s7  ;;  %1184 = vrot.lane.b32.xlu1 %v1178_v36, %s1588_s8  ;;  %v1480_v35 = vld [vmem:[%s1871_s0 + $0x60] sm:$0xff] }
  0x6c   : > { %1067 = vrot.lane.b32.xlu2 %v1063_v31, %s1587_s7 }
  0x73   : > { %1182 = vrot.lane.b32.xlu1 %v1177_v37, %s1588_s8  ;;  %1180 = vrot.lane.b32.xlu0 %v1176_v38, %s1588_s8 }
  0x74   : > { %1186 = vrot.lane.b32.xlu2 %v1179_v39, %s1588_s8  ;;  %s1849_s8 = scalar_lea.vmem %s1875_s4, %s1520_s5 }
  0x83   : > { %v503_v40 = vpop.permute.xlu2 %502 }
  0x8b   : > { %v306_v41 = vpop.permute.xlu1 %305  ;;  %v505_v42 = vpop.permute.xlu2 %504 }
  0x8c   : > { %v511_v53 = vsel %vm510_vm3, %v503_v40, %v505_v42 }
  0x93   : > { %v308_v43 = vpop.permute.xlu1 %307 }
  0x94   : > { %v314_v46 = vsel %vm313_vm0, %v306_v41, %v308_v43  ;;  %v1481_v41 = vld [vmem:[%s1871_s0 + $0x68] sm:$0xff] }
  0x95   : > { %v310_v47 = vpop.permute.xlu0 %309  ;;  %1418 = vmatpush.msk.msra.mxu0 %vm324_vm1, %v314_v46  ;;  %1517 = vmatpush.msk.msra.mxu3 %vm324_vm1, %v314_v46  ;;  %v620_v48 = vpop.permute.xlu2 %619  ;;  %v1280_v46 = vld [vmem:[%s1872_s1 + $0x8] sm:$0xff] }
  0x96   : > { %v315_v49 = vsel %vm313_vm0, %v308_v43, %v310_v47  ;;  %1419 = vmatmul.msk.f32.vlgmr.msra.gmra.mxu0 %vm317_vm2, %v1416_v44  ;;  %1420 = vmatmul.msk.f32.vlgmr.msra.gmra.mxu3 %vm317_vm2, %v1417_v45  ;;  %v1491_v43 = vld [vmem:[%s1871_s0 + $0x70] sm:$0xff] }
  0x97   : > { %1421 = vmatpush.msk.msra.mxu1 %vm324_vm1, %v315_v49  ;;  %1430 = vmatpush.msk.msrb.mxu0 %vm324_vm1, %v1651_v8  ;;  %v1492_v49 = vld [vmem:[%s1871_s0 + $0x78] sm:$0xff] }
  0x98   : > { %1422 = vmatmul.msk.f32.vlgmr.msra.gmra.mxu1 %vm317_vm2, %v1416_v44  ;;  %1427 = vmatpush.msk.msrb.mxu3 %vm324_vm1, %v1649_v7  ;;  %v1447_v7 = vld [vmem:[%s1871_s0 + $0x30] sm:$0xff] }
  0x99   : > { %1433 = vmatpush.msk.msrb.mxu1 %vm324_vm1, %v1655_v13 }
  0x9d   : > { %v312_v51 = vpop.permute.xlu0 %311 }
  0x9e   : > { %v316_v52 = vsel %vm313_vm0, %v310_v47, %v312_v51  ;;  %1428 = vmatmul.msk.f32.vlgmr.msrb.gmra.mxu3 %vm317_vm2, %v288_v50  ;;  %1431 = vmatmul.msk.f32.vlgmr.msrb.gmra.mxu0 %vm317_vm2, %v288_v50  ;;  %v622_v54 = vpop.permute.xlu2 %621  ;;  %v1279_v51 = vld [vmem:[%s1872_s1] sm:$0xff] }
  0x9f   : > { %1424 = vmatpush.msk.msra.mxu2 %vm324_vm1, %v316_v52  ;;  %v626_v60 = vsel %vm623_vm4, %v620_v48, %v622_v54  ;;  %v1503_v52 = vld [vmem:[%s1871_s0 + $0x88] sm:$0xff] }
  0xa0   : > { %1425 = vmatmul.msk.f32.vlgmr.msra.gmra.mxu2 %vm317_vm2, %v1416_v44  ;;  %1423 = vmatmul.msk.f32.gmra.mxu1 %vm317_vm2, %v1417_v45 }
  0xa1   : > { %1438 = vmatpush.msk.msrb.mxu2 %vm324_vm1, %v511_v53 }
  0xa3   : > { %v618_v55 = vpop.permute.xlu1 %617 }
  0xa4   : > { %v625_v57 = vsel %vm623_vm4, %v618_v55, %v620_v48 }
  0xa5   : > { %v507_v58 = vpop.permute.xlu0 %506  ;;  %1452 = vmatpush.msk.msra.mxu2 %vm324_vm1, %v625_v57 }
  0xa6   : > { %v512_v59 = vsel %vm510_vm3, %v505_v42, %v507_v58  ;;  %1429 = vmatmul.msk.f32.gmra.mxu3 %vm317_vm2, %v289_v56  ;;  %1432 = vmatmul.msk.f32.gmra.mxu0 %vm317_vm2, %v289_v56  ;;  %v729_v61 = vpop.permute.xlu2 %728 }
  0xa7   : > { %1441 = vmatpush.msk.msra.mxu3 %vm324_vm1, %v512_v59 }
  0xa8   : > { %1426 = vmatmul.msk.f32.gmra.mxu2 %vm317_vm2, %v1417_v45  ;;  %1434 = vmatmul.msk.f32.vlgmr.msrb.gmra.mxu1 %vm317_vm2, %v288_v50  ;;  %v1589_v45 = vmov 0   ;;  %v1502_v50 = vld [vmem:[%s1871_s0 + $0x80] sm:$0xff] }
  0xa9   : > { %1455 = vmatpush.msk.msrb.mxu3 %vm324_vm1, %v626_v60  ;;  %1556 = vset.pattern.permute.xlu0 %v1589_v45 }
  0xaa   : > { %1555 = vset.pattern.permute.xlu2 %v1589_v45  ;;  %1288 = vperm.xlu0 %1556, %v1280_v46  }
  0xab   : > { %v616_v63 = vpop.permute.xlu1 %615  ;;  %1283 = vperm.xlu2 %1555, %v1279_v51  }
  0xac   : > { %v624_v0 = vsel %vm623_vm4, %v616_v63, %v618_v55 }
  0xad   : > { %v509_v1 = vpop.permute.xlu0 %508  ;;  %1449 = vmatpush.msk.msra.mxu1 %vm324_vm1, %v624_v0 }
  0xae   : > { %v513_v2 = vsel %vm510_vm3, %v507_v58, %v509_v1  ;;  %1442 = vmatmul.msk.f32.vlgmr.msra.gmra.mxu3 %vm317_vm2, %v1436_v62  ;;  %v844_v3 = vpop.permute.xlu2 %843 }
  0xaf   : > { %1444 = vmatpush.msk.msra.mxu0 %vm324_vm1, %v513_v2 }
  0xb0   : > { %1439 = vmatmul.msk.f32.vlgmr.msrb.gmra.mxu2 %vm317_vm2, %v1436_v62  ;;  %1435 = vmatmul.msk.f32.gmra.mxu1 %vm317_vm2, %v289_v56 }
  0xb1   : > { %1445 = vmatmul.msk.f32.vlgmr.msra.gmra.mxu0 %vm317_vm2, %v1436_v62 }
  0xb5   : > { %v733_v5 = vpop.permute.xlu0 %732  ;;  %v735_v6 = vpop.permute.xlu1 %734 }
  0xb6   : > { %v739_v8 = vsel %vm736_vm5, %v733_v5, %v735_v6  ;;  %1443 = vmatmul.msk.f32.gmra.mxu3 %vm317_vm2, %v1437_v4  ;;  %v846_v9 = vpop.permute.xlu2 %845 }
  0xb7   : > { %1466 = vmatpush.msk.msrb.mxu2 %vm324_vm1, %v739_v8  ;;  %v851_v17 = vsel %vm849_vm6, %v844_v3, %v846_v9 }
  0xb8   : > { %1440 = vmatmul.msk.f32.gmra.mxu2 %vm317_vm2, %v1437_v4  ;;  %1450 = vmatmul.msk.f32.vlgmr.msra.gmra.mxu1 %vm317_vm2, %v1447_v7 }
  0xb9   : > { %1446 = vmatmul.msk.f32.gmra.mxu0 %vm317_vm2, %v1437_v4 }
  0xbd   : > { %v731_v10 = vpop.permute.xlu0 %730  ;;  %v842_v11 = vpop.permute.xlu1 %841 }
  0xbe   : > { %v737_v13 = vsel %vm736_vm5, %v729_v61, %v731_v10  ;;  %v738_v14 = vsel %vm736_vm5, %v731_v10, %v733_v5  ;;  %v850_v15 = vsel %vm849_vm6, %v842_v11, %v844_v3  ;;  %1456 = vmatmul.msk.f32.vlgmr.msrb.gmra.mxu3 %vm317_vm2, %v1447_v7  ;;  %v1070_v18 = vpop.permute.xlu2 %1069 }
  0xbf   : > { %1463 = vmatpush.msk.msrb.mxu1 %vm324_vm1, %v738_v14  ;;  %1460 = vmatpush.msk.msrb.mxu0 %vm324_vm1, %v737_v13 }
  0xc0   : > { %1453 = vmatmul.msk.f32.vlgmr.msra.gmra.mxu2 %vm317_vm2, %v1447_v7  ;;  %1451 = vmatmul.msk.f32.gmra.mxu1 %vm317_vm2, %v1448_v12 }
  0xc1   : > { %1461 = vmatmul.msk.f32.vlgmr.msrb.gmra.mxu0 %vm317_vm2, %v1458_v16  ;;  %1471 = vmatpush.msk.msra.mxu3 %vm324_vm1, %v850_v15 }
  0xc2   : > { %1474 = vmatpush.msk.msra.mxu0 %vm324_vm1, %v851_v17 }
  0xc5   : > { %v955_v19 = vpop.permute.xlu0 %954  ;;  %v957_v20 = vpop.permute.xlu1 %956 }
  0xc6   : > { %v963_v21 = vsel %vm962_vm7, %v955_v19, %v957_v20  ;;  %1457 = vmatmul.msk.f32.gmra.mxu3 %vm317_vm2, %v1448_v12  ;;  %v1068_v24 = vpop.permute.xlu2 %1067 }
  0xc7   : > { %1482 = vmatpush.msk.msra.mxu2 %vm324_vm1, %v963_v21  ;;  %v1076_v29 = vsel %vm1075_vm8, %v1068_v24, %v1070_v18 }
  0xc8   : > { %1454 = vmatmul.msk.f32.gmra.mxu2 %vm317_vm2, %v1448_v12  ;;  %1464 = vmatmul.msk.f32.vlgmr.msrb.gmra.mxu1 %vm317_vm2, %v1458_v16 }
  0xc9   : > { %1462 = vmatmul.msk.f32.gmra.mxu0 %vm317_vm2, %v1459_v22 }
  0xcd   : > { %v848_v25 = vpop.permute.xlu0 %847  ;;  %v959_v26 = vpop.permute.xlu1 %958 }
  0xce   : > { %v852_v27 = vsel %vm849_vm6, %v846_v9, %v848_v25  ;;  %v964_v28 = vsel %vm962_vm7, %v957_v20, %v959_v26  ;;  %1472 = vmatmul.msk.f32.vlgmr.msra.gmra.mxu3 %vm317_vm2, %v1469_v23  ;;  %v1187_v36 = vpop.permute.xlu2 %1186 }
  0xcf   : > { %1477 = vmatpush.msk.msra.mxu1 %vm324_vm1, %v852_v27  ;;  %1485 = vmatpush.msk.msrb.mxu3 %vm324_vm1, %v964_v28 }
  0xd0   : > { %1467 = vmatmul.msk.f32.vlgmr.msrb.gmra.mxu2 %vm317_vm2, %v1458_v16  ;;  %1465 = vmatmul.msk.f32.gmra.mxu1 %vm317_vm2, %v1459_v22 }
  0xd1   : > { %1475 = vmatmul.msk.f32.vlgmr.msra.gmra.mxu0 %vm317_vm2, %v1469_v23  ;;  %1493 = vmatpush.msk.msrb.mxu1 %vm324_vm1, %v1076_v29 }
  0xd5   : > { %v1072_v31 = vpop.permute.xlu0 %1071  ;;  %v961_v32 = vpop.permute.xlu1 %960 }
  0xd6   : > { %v1077_v33 = vsel %vm1075_vm8, %v1070_v18, %v1072_v31  ;;  %v965_v34 = vsel %vm962_vm7, %v959_v26, %v961_v32  ;;  %1473 = vmatmul.msk.f32.gmra.mxu3 %vm317_vm2, %v1470_v30 }
  0xd7   : > { %1488 = vmatpush.msk.msrb.mxu0 %vm324_vm1, %v965_v34  ;;  %1496 = vmatpush.msk.msrb.mxu2 %vm324_vm1, %v1077_v33 }
  0xd8   : > { %1468 = vmatmul.msk.f32.gmra.mxu2 %vm317_vm2, %v1459_v22  ;;  %1478 = vmatmul.msk.f32.vlgmr.msra.gmra.mxu1 %vm317_vm2, %v1469_v23 }
  0xd9   : > { %1476 = vmatmul.msk.f32.gmra.mxu0 %vm317_vm2, %v1470_v30 }
  0xdd   : > { %v1074_v37 = vpop.permute.xlu0 %1073  ;;  %v1185_v38 = vpop.permute.xlu1 %1184 }
  0xde   : > { %v1078_v39 = vsel %vm1075_vm8, %v1072_v31, %v1074_v37  ;;  %1486 = vmatmul.msk.f32.vlgmr.msrb.gmra.mxu3 %vm317_vm2, %v1480_v35  ;;  %v1191_v40 = vsel %vm1188_vm9, %v1185_v38, %v1187_v36 }
  0xdf   : > { %1499 = vmatpush.msk.msra.mxu3 %vm324_vm1, %v1078_v39 }
  0xe0   : > { %1483 = vmatmul.msk.f32.vlgmr.msra.gmra.mxu2 %vm317_vm2, %v1480_v35  ;;  %1479 = vmatmul.msk.f32.gmra.mxu1 %vm317_vm2, %v1470_v30 }
  0xe1   : > { %1489 = vmatmul.msk.f32.vlgmr.msrb.gmra.mxu0 %vm317_vm2, %v1480_v35  ;;  %1510 = vmatpush.msk.msra.mxu2 %vm324_vm1, %v1191_v40 }
  0xe5   : > { %v1183_v42 = vpop.permute.xlu1 %1182  ;;  %v1181_v44 = vpop.permute.xlu0 %1180 }
  0xe6   : > { %v1190_v47 = vsel %vm1188_vm9, %v1183_v42, %v1185_v38  ;;  %1487 = vmatmul.msk.f32.gmra.mxu3 %vm317_vm2, %v1481_v41  ;;  %v1189_v48 = vsel %vm1188_vm9, %v1181_v44, %v1183_v42 }
  0xe7   : > { %1507 = vmatpush.msk.msra.mxu1 %vm324_vm1, %v1190_v47  ;;  %1504 = vmatpush.msk.msra.mxu0 %vm324_vm1, %v1189_v48 }
  0xe8   : > { %1484 = vmatmul.msk.f32.gmra.mxu2 %vm317_vm2, %v1481_v41  ;;  %1494 = vmatmul.msk.f32.vlgmr.msrb.gmra.mxu1 %vm317_vm2, %v1491_v43 }
  0xe9   : > { %1490 = vmatmul.msk.f32.gmra.mxu0 %vm317_vm2, %v1481_v41 }
  0xee   : > { %1500 = vmatmul.msk.f32.vlgmr.msra.gmra.mxu3 %vm317_vm2, %v1491_v43 }
  0xf0   : > { %1497 = vmatmul.msk.f32.vlgmr.msrb.gmra.mxu2 %vm317_vm2, %v1491_v43  ;;  %1495 = vmatmul.msk.f32.gmra.mxu1 %vm317_vm2, %v1492_v49 }
  0xf1   : > { %1505 = vmatmul.msk.f32.vlgmr.msra.gmra.mxu0 %vm317_vm2, %v1502_v50 }
  0xf6   : > { %1501 = vmatmul.msk.f32.gmra.mxu3 %vm317_vm2, %v1492_v49 }
  0xf8   : > { %1498 = vmatmul.msk.f32.gmra.mxu2 %vm317_vm2, %v1492_v49  ;;  %1508 = vmatmul.msk.f32.vlgmr.msra.gmra.mxu1 %vm317_vm2, %v1502_v50 }
  0xf9   : > { %1506 = vmatmul.msk.f32.gmra.mxu0 %vm317_vm2, %v1503_v52 }
 0x100   : > { %1511 = vmatmul.msk.f32.vlgmr.msra.gmra.mxu2 %vm317_vm2, %v1502_v50  ;;  %1509 = vmatmul.msk.f32.gmra.mxu1 %vm317_vm2, %v1503_v52 }
 0x108   : > { %1512 = vmatmul.msk.f32.gmra.mxu2 %vm317_vm2, %v1503_v52 }
 0x113   : > { %v348_v53 = vpop.f32.mrf.mxu0 }
 0x115   : > { %v371_v54 = vpop.f32.mrf.mxu1 }
 0x119   : > { %v351_v55 = vpop.f32.mrf.mxu3 }
 0x11b   : > { %v459_v56 = vpop.f32.mrf.mxu0 }
 0x11c   : > { %v460_v57 = vadd.f32 %v459_v56, %v371_v54 }
 0x11d   : > { %v374_v58 = vpop.f32.mrf.mxu1 }
 0x121   : > { %v436_v59 = vpop.f32.mrf.mxu3 }
 0x122   : > { %v437_v29 = vadd.f32 %v436_v59, %v348_v53  ;;  %v1284_v53 = vpop.permute.xlu2 %1283 }
 0x123   : > { %v394_v60 = vpop.f32.mrf.mxu2  ;;  %v462_v61 = vpop.f32.mrf.mxu0 }
 0x124   : > { %v463_v62 = vadd.f32 %v462_v61, %v374_v58 }
 0x125   : > { %v482_v63 = vpop.f32.mrf.mxu1 }
 0x126   : > { %v483_v0 = vadd.f32 %v482_v63, %v394_v60 }
 0x129   : > { %v439_v1 = vpop.f32.mrf.mxu3 }
 0x12a   : > { %v440_v36 = vadd.f32 %v439_v1, %v351_v55 }
 0x12b   : > { %v397_v2 = vpop.f32.mrf.mxu2 }
 0x12d   : > { %v485_v3 = vpop.f32.mrf.mxu1 }
 0x12e   : > { %v486_v4 = vadd.f32 %v485_v3, %v397_v2  ;;  %v589_v5 = vpop.f32.mrf.mxu0 }
 0x12f   : > { %v1835_v6 = vadd.f32 %v589_v5, %v483_v0 }
 0x131   : > { %v566_v7 = vpop.f32.mrf.mxu3 }
 0x132   : > { %v596_v42 = vadd.f32 %v566_v7, %v460_v57  ;;  %v1289_v7 = vpop.permute.xlu0 %1288 }
 0x133   : > { %v543_v8 = vpop.f32.mrf.mxu2 }
 0x134   : > { %v595_v32 = vadd.f32 %v543_v8, %v437_v29 }
 0x135   : > { %v656_v9 = vpop.f32.mrf.mxu1 }
 0x136   : > { %v592_v10 = vpop.f32.mrf.mxu0  ;;  %v708_v34 = vadd.f32 %v656_v9, %v595_v32 }
 0x137   : > { %v1837_v11 = vadd.f32 %v592_v10, %v486_v4 }
 0x139   : > { %v569_v12 = vpop.f32.mrf.mxu3 }
 0x13a   : > { %v599_v56 = vadd.f32 %v569_v12, %v463_v62 }
 0x13b   : > { %v546_v13 = vpop.f32.mrf.mxu2 }
 0x13c   : > { %v598_v40 = vadd.f32 %v546_v13, %v440_v36 }
 0x13d   : > { %v659_v14 = vpop.f32.mrf.mxu1 }
 0x13e   : > { %v769_v15 = vpop.f32.mrf.mxu0  ;;  %v711_v46 = vadd.f32 %v659_v14, %v598_v40 }
 0x13f   : > { %v821_v37 = vadd.f32 %v769_v15, %v708_v34 }
 0x141   : > { %v702_v16 = vpop.f32.mrf.mxu3 }
 0x142   : > { %v710_v9 = vadd.f32 %v702_v16, %v1835_v6 }
 0x143   : > { %v679_v17 = vpop.f32.mrf.mxu2 }
 0x144   : > { %v709_v45 = vadd.f32 %v679_v17, %v596_v42 }
 0x145   : > { %v792_v18 = vpop.f32.mrf.mxu1 }
 0x146   : > { %v772_v19 = vpop.f32.mrf.mxu0  ;;  %v822_v51 = vadd.f32 %v792_v18, %v709_v45 }
 0x147   : > { %v824_v48 = vadd.f32 %v772_v19, %v711_v46 }
 0x149   : > { %v1839_v21 = vpop.f32.mrf.mxu3 }
 0x14b   : > { %v682_v20 = vpop.f32.mrf.mxu2 }
 0x14c   : > { %v712_v60 = vadd.f32 %v682_v20, %v599_v56 }
 0x14d   : > { %v795_v22 = vpop.f32.mrf.mxu1 }
 0x14e   : > { %v905_v23 = vpop.f32.mrf.mxu0  ;;  %v825_v62 = vadd.f32 %v795_v22, %v712_v60 }
 0x14f   : > { %v935_v58 = vadd.f32 %v905_v23, %v822_v51 }
 0x151   : > { %v882_v25 = vpop.f32.mrf.mxu3 }
 0x152   : > { %v934_v41 = vadd.f32 %v882_v25, %v821_v37  ;;  %v713_v25 = vadd.f32 %v1839_v21, %v1837_v11 }
 0x153   : > { %v815_v24 = vpop.f32.mrf.mxu2 }
 0x154   : > { %v823_v14 = vadd.f32 %v815_v24, %v710_v9 }
 0x155   : > { %v928_v26 = vpop.f32.mrf.mxu1 }
 0x156   : > { %v908_v27 = vpop.f32.mrf.mxu0  ;;  %v936_v22 = vadd.f32 %v928_v26, %v823_v14 }
 0x157   : > { %v938_v10 = vadd.f32 %v908_v27, %v825_v62 }
 0x159   : > { %v885_v33 = vpop.f32.mrf.mxu3 }
 0x15a   : > { %v937_v54 = vadd.f32 %v885_v33, %v824_v48 }
 0x15b   : > { %v1841_v28 = vpop.f32.mrf.mxu2 }
 0x15c   : > { %v826_v16 = vadd.f32 %v1841_v28, %v713_v25 }
 0x15d   : > { %v1843_v30 = vpop.f32.mrf.mxu1 }
 0x15e   : > { %v1041_v31 = vpop.f32.mrf.mxu0  ;;  %v939_v33 = vadd.f32 %v1843_v30, %v826_v16 }
 0x15f   : > { %v1049_v29 = vadd.f32 %v1041_v31, %v936_v22 }
 0x161   : > { %v1018_v44 = vpop.f32.mrf.mxu3 }
 0x162   : > { %v1048_v61 = vadd.f32 %v1018_v44, %v935_v58 }
 0x163   : > { %v995_v35 = vpop.f32.mrf.mxu2 }
 0x164   : > { %v1047_v43 = vadd.f32 %v995_v35, %v934_v41 }
 0x165   : > { %v1108_v38 = vpop.f32.mrf.mxu1 }
 0x166   : > { %v1044_v39 = vpop.f32.mrf.mxu0  ;;  %v1160_v49 = vadd.f32 %v1108_v38, %v1047_v43 }
 0x167   : > { %v1052_v36 = vadd.f32 %v1044_v39, %v939_v33 }
 0x169   : > { %v1021_v63 = vpop.f32.mrf.mxu3 }
 0x16a   : > { %v1051_v15 = vadd.f32 %v1021_v63, %v938_v10 }
 0x16b   : > { %v998_v47 = vpop.f32.mrf.mxu2 }
 0x16c   : > { %v1050_v57 = vadd.f32 %v998_v47, %v937_v54 }
 0x16d   : > { %v1111_v50 = vpop.f32.mrf.mxu1 }
 0x16e   : > { %v1221_v52 = vpop.f32.mrf.mxu0  ;;  %v1163_v2 = vadd.f32 %v1111_v50, %v1050_v57 }
 0x16f   : > { %v1273_v55 = vadd.f32 %v1221_v52, %v1160_v49 }
 0x171   : > { %v1291_v59 = vadd.f32 %v1284_v53, %v1273_v55  ;;  %v1154_v19 = vpop.f32.mrf.mxu3 }
 0x172   : > { %v1162_v27 = vadd.f32 %v1154_v19, %v1049_v29 }
 0x173   : > { %v1131_v0 = vpop.f32.mrf.mxu2  ;;  %1297 = vst [vmem:[%s1849_s8] sm:$0xff] %v1291_v59 }
 0x174   : > { %v1161_v1 = vadd.f32 %v1131_v0, %v1048_v61 }
 0x175   : > { %v1244_v3 = vpop.f32.mrf.mxu1 }
 0x176   : > { %v1224_v4 = vpop.f32.mrf.mxu0  ;;  %v1274_v5 = vadd.f32 %v1244_v3, %v1161_v1 }
 0x177   : > { %v1276_v8 = vadd.f32 %v1224_v4, %v1163_v2 }
 0x178   : > { %v1292_v12 = vadd.f32 %v1284_v53, %v1274_v5 }
 0x179   : > { %v1294_v13 = vadd.f32 %v1289_v7, %v1276_v8  ;;  %v1157_v35 = vpop.f32.mrf.mxu3 }
 0x17a   : > { %1298 = vst [vmem:[%s1849_s8 + $0x8] sm:$0xff] %v1292_v12  ;;  %v1165_v26 = vadd.f32 %v1157_v35, %v1052_v36 }
 0x17b   : > { %v1134_v17 = vpop.f32.mrf.mxu2  ;;  %1300 = vst [vmem:[%s1849_s8 + $0x18] sm:$0xff] %v1294_v13 }
 0x17c   : > { %v1164_v18 = vadd.f32 %v1134_v17, %v1051_v15 }
 0x17d   : > { %v1247_v20 = vpop.f32.mrf.mxu1 }
 0x17e   : > { %v1277_v23 = vadd.f32 %v1247_v20, %v1164_v18 }
 0x180   : > { %v1295_v6 = vadd.f32 %v1289_v7, %v1277_v23 }
 0x182   : > { %1301 = vst [vmem:[%s1849_s8 + $0x20] sm:$0xff] %v1295_v6 }
 0x183   : > { %v1267_v24 = vpop.f32.mrf.mxu2 }
 0x184   : > { %v1275_v32 = vadd.f32 %v1267_v24, %v1162_v27 }
 0x186   : > { %v1293_v34 = vadd.f32 %v1284_v53, %v1275_v32 }
 0x188   : > { %1299 = vst [vmem:[%s1849_s8 + $0x10] sm:$0xff] %v1293_v34 }
 0x18b   : > { %v1270_v37 = vpop.f32.mrf.mxu2 }
 0x18c   : > { %v1278_v38 = vadd.f32 %v1270_v37, %v1165_v26 }
 0x18e   : > { %v1296_v40 = vadd.f32 %v1289_v7, %v1278_v38 }
 0x190   : > { %1302 = vst [vmem:[%s1849_s8 + $0x28] sm:$0xff] %v1296_v40 }
 0x191 PF: > { %s14_s17 = sadd.s32 1, %s1579_s17   ;;  %s1876_s15 = smov %s1575_s16 }
 0x192   : > { %p11_p5 = scmp.ge.s32.totalorder %s14_s17, 4   ;;  %s1877_s16 = smov %s1879_s18 }
 0x194   :  { %13 = sbr.rel (!%p11_p5) target bundleno = 2 (0x2), region = 86 }

</bundles_post_ra>
